<compile_context>
chip_gen: v7x
topology: tpu7x:2x2x1
jax: 0.10.0
libtpu: 0.0.40
codegen_flags: <defaults>
</compile_context>

<pallas_src>
import functools

import jax
import jax.numpy as jnp
import numpy as np
from jax.experimental import pallas as pl
from jax.experimental.pallas import tpu as pltpu


def _quant_kernel(a_ref, c_ref, cb_ref, x_ref, z_ref, *,
                  num_terms, uniform_ac, bf16_tanh):
    """One grid step: apply the smooth quantizer to a (TN, TM) tile of x.

    a_ref, c_ref, cb_ref : SMEM refs (scalar-prefetch), shape (K,) — codebook (cb = c*b).
    x_ref                : VMEM ref, input tile  (TN, TM).
    z_ref                : VMEM ref, output tile (TN, TM).
    """
    x = x_ref[...]
    if x.dtype != jnp.float32:
        x = x.astype(jnp.float32)

    def _tanh(arg):
        if bf16_tanh:
            # f32 argument math, bf16 transcendental (EUP throughput doubler on v6e/v7x),
            # f32 accumulation.  Not accurate to 1e-5; gated by flag.
            return jnp.tanh(arg.astype(jnp.bfloat16)).astype(jnp.float32)
        return jnp.tanh(arg)

    # K is small & static -> fully unrolled at trace time.  tanh goes to the EUP
    # (separate VLIW slot); the rest is VPU elementwise on the whole tile.
    if uniform_ac:
        # a[i] == a[0], c[i] == c[0] for all i (construction of this module):
        # z = a0 * sum_i tanh(c0*x - cb[i])
        y = c_ref[0] * x
        s = _tanh(y - cb_ref[0])
        for i in range(1, num_terms):
            s = s + _tanh(y - cb_ref[i])
        z_ref[...] = a_ref[0] * s
    else:
        # General path; first term initializes z (no zeros fill + add).
        z = a_ref[0] * _tanh(c_ref[0] * x - cb_ref[0])
        for i in range(1, num_terms):
            z = z + a_ref[i] * _tanh(c_ref[i] * x - cb_ref[i])
        z_ref[...] = z


def quantization_layer_params(num_code_words, max_labels, max_samples):
    """Deterministic parameter init, mirroring the PyTorch __init__."""
    k = num_code_words - 1
    a = np.ones(k) * max_labels / num_code_words
    b = np.linspace(-1.0, 1.0, k) * max_samples
    if k > 1:
        c = 15.0 / np.mean(np.diff(b)) * np.ones(k)
    else:
        c = 15.0 / int(b[0]) * np.ones(k)  # mirrors PyTorch (ZeroDivide if |b0| < 1)
    return (jnp.asarray(a, jnp.float32),
            jnp.asarray(b, jnp.float32),
            jnp.asarray(c, jnp.float32))


def _round_up(v, m):
    return ((v + m - 1) // m) * m


def _pick_tile(dim, cap, align):
    """Largest aligned tile <= cap that still yields >= 2 grid points along this axis
    whenever dim > align, so v7x's two TensorCores (and megacore sharding) get work."""
    if dim <= align:
        return dim                                     # full-dim block is always legal
    return min(cap, _round_up(pl.cdiv(dim, 2), align))  # multiple of `align`, <= dim


def quantization_layer(x, a, b, c, *, row_tile=512, col_tile=1024,
                       use_bf16_tanh=False, uniform_ac=None):
    """Pallas-backed forward pass of QuantizationLayer.

    x : [N, M] float array (f32 or bf16; bf16 halves input HBM traffic, cast happens
        inside the kernel).  a, b, c : [K] codebook params.  Returns z : [N, M] float32.
    """
    n, m = x.shape
    a32 = jnp.asarray(a, jnp.float32)
    b32 = jnp.asarray(b, jnp.float32)
    c32 = jnp.asarray(c, jnp.float32)
    cb32 = c32 * b32                      # scalar precompute: c[i]*b[i]
    k = a32.shape[0]

    # Trace-time detection of the uniform-(a, c) structure (falls back if traced).
    if uniform_ac is None:
        try:
            a_np = np.asarray(a32)
            c_np = np.asarray(c32)
            uniform_ac = bool(np.all(a_np == a_np[0]) and np.all(c_np == c_np[0]))
        except Exception:  # tracer (inside jit) -> take the general path
            uniform_ac = False

    # Lane-dense fallback: narrow / ragged last dims cause masked vst.msk stores.
    # The op is purely elementwise, so any row-major reshape is semantics-preserving.
    reshaped = False
    x_work = x
    if (m % 128 != 0) and ((n * m) % 128 == 0):
        x_work = x.reshape(n * m // 128, 128)
        reshaped = True
    nw, mw = x_work.shape

    # Tiles: multiples of (8, 128) (or the full dim), capped both by VMEM budget and by
    # the ">= 2 grid points per large axis" rule for 2-TC sharding.
    tn = _pick_tile(nw, row_tile, 8)
    tm = _pick_tile(mw, col_tile, 128)
    grid = (pl.cdiv(nw, tn), pl.cdiv(mw, tm))

    kernel = functools.partial(_quant_kernel, num_terms=k,
                               uniform_ac=uniform_ac, bf16_tanh=use_bf16_tanh)

    z = pl.pallas_call(
        kernel,
        out_shape=jax.ShapeDtypeStruct((nw, mw), jnp.float32),
        grid_spec=pltpu.PrefetchScalarGridSpec(
            # a, c, c*b are DMA'd to SMEM once before the grid runs (no per-step copies).
            num_scalar_prefetch=3,
            grid=grid,
            in_specs=[
                pl.BlockSpec((tn, tm), lambda i, j, a_s, c_s, cb_s: (i, j)),  # x tile
            ],
            out_specs=pl.BlockSpec((tn, tm), lambda i, j, a_s, c_s, cb_s: (i, j)),
        ),
        compiler_params=pltpu.CompilerParams(
            dimension_semantics=("parallel", "parallel")),
    )(a32, c32, cb32, x_work)

    if reshaped:
        z = z.reshape(n, m)
    return z


def _reference(x, a, b, c):
    """Pure-JAX reference of the PyTorch forward (f32; see f64 TODO above)."""
    x32 = x.astype(jnp.float32)
    z = jnp.sum(a[None, None, :] * jnp.tanh(c[None, None, :] *
                                            (x32[:, :, None] - b[None, None, :])),
                axis=-1)
    return z


if __name__ == "__main__":
    num_code_words = 8
    max_labels = 7.0
    max_samples = 1.0

    a, b, c = quantization_layer_params(num_code_words, max_labels, max_samples)

    key = jax.random.PRNGKey(0)
    k1, k2 = jax.random.split(key)

    # Main case: [N, M] = [64, 256] (lane-aligned last dim).
    x = jax.random.normal(k1, (64, 256), dtype=jnp.float32) * max_samples
    z = quantization_layer(x, a, b, c)
    jax.block_until_ready(z)
    z_ref = _reference(x, a, b, c)
    assert z.shape == x.shape
    np.testing.assert_allclose(np.asarray(z), np.asarray(z_ref), rtol=1e-5, atol=1e-5)

    # Ragged-last-dim case: exercises the lane-dense reshape fallback (96 % 128 != 0).
    x2 = jax.random.normal(k2, (64, 96), dtype=jnp.float32) * max_samples
    z2 = quantization_layer(x2, a, b, c)
    jax.block_until_ready(z2)
    z2_ref = _reference(x2, a, b, c)
    assert z2.shape == x2.shape
    np.testing.assert_allclose(np.asarray(z2), np.asarray(z2_ref), rtol=1e-5, atol=1e-5)

    print("KERNEL_OK")
</pallas_src>

<mosaic_0001>
module attributes {stable_mosaic.version = 11 : i64} {
  func.func @_quant_kernel(%arg0: i32, %arg1: i32, %arg2: memref<7xf32, #tpu.memory_space<smem>>, %arg3: memref<7xf32, #tpu.memory_space<smem>>, %arg4: memref<7xf32, #tpu.memory_space<smem>>, %arg5: memref<32x128xf32, #tpu.memory_space<vmem>>, %arg6: memref<32x128xf32, #tpu.memory_space<vmem>>) attributes {dimension_semantics = [#tpu.dimension_semantics<parallel>, #tpu.dimension_semantics<parallel>], iteration_bounds = array<i64: 2, 2>, scalar_prefetch = 3 : i64, scratch_operands = 0 : i64, tpu.core_type = #tpu.core_type<tc>, window_params = [{transform_indices = @transform_0, window_bounds = array<i64: 32, 128>}, {transform_indices = @transform_1, window_bounds = array<i64: 32, 128>}]} {
    %c0 = arith.constant 0 : index
    %c0_0 = arith.constant 0 : index
    %0 = vector.load %arg5[%c0, %c0_0] : memref<32x128xf32, #tpu.memory_space<vmem>>, vector<32x128xf32>
    %c0_1 = arith.constant 0 : index
    %1 = memref.load %arg3[%c0_1] : memref<7xf32, #tpu.memory_space<smem>>
    %2 = vector.broadcast %1 : f32 to vector<32x128xf32>
    %3 = arith.mulf %2, %0 : vector<32x128xf32>
    %c0_2 = arith.constant 0 : index
    %4 = memref.load %arg4[%c0_2] : memref<7xf32, #tpu.memory_space<smem>>
    %5 = vector.broadcast %4 : f32 to vector<32x128xf32>
    %6 = arith.subf %3, %5 : vector<32x128xf32>
    %7 = math.tanh %6 : vector<32x128xf32>
    %c1 = arith.constant 1 : index
    %8 = memref.load %arg4[%c1] : memref<7xf32, #tpu.memory_space<smem>>
    %9 = vector.broadcast %8 : f32 to vector<32x128xf32>
    %10 = arith.subf %3, %9 : vector<32x128xf32>
    %11 = math.tanh %10 : vector<32x128xf32>
    %12 = arith.addf %7, %11 : vector<32x128xf32>
    %c2 = arith.constant 2 : index
    %13 = memref.load %arg4[%c2] : memref<7xf32, #tpu.memory_space<smem>>
    %14 = vector.broadcast %13 : f32 to vector<32x128xf32>
    %15 = arith.subf %3, %14 : vector<32x128xf32>
    %16 = math.tanh %15 : vector<32x128xf32>
    %17 = arith.addf %12, %16 : vector<32x128xf32>
    %c3 = arith.constant 3 : index
    %18 = memref.load %arg4[%c3] : memref<7xf32, #tpu.memory_space<smem>>
    %19 = vector.broadcast %18 : f32 to vector<32x128xf32>
    %20 = arith.subf %3, %19 : vector<32x128xf32>
    %21 = math.tanh %20 : vector<32x128xf32>
    %22 = arith.addf %17, %21 : vector<32x128xf32>
    %c4 = arith.constant 4 : index
    %23 = memref.load %arg4[%c4] : memref<7xf32, #tpu.memory_space<smem>>
    %24 = vector.broadcast %23 : f32 to vector<32x128xf32>
    %25 = arith.subf %3, %24 : vector<32x128xf32>
    %26 = math.tanh %25 : vector<32x128xf32>
    %27 = arith.addf %22, %26 : vector<32x128xf32>
    %c5 = arith.constant 5 : index
    %28 = memref.load %arg4[%c5] : memref<7xf32, #tpu.memory_space<smem>>
    %29 = vector.broadcast %28 : f32 to vector<32x128xf32>
    %30 = arith.subf %3, %29 : vector<32x128xf32>
    %31 = math.tanh %30 : vector<32x128xf32>
    %32 = arith.addf %27, %31 : vector<32x128xf32>
    %c6 = arith.constant 6 : index
    %33 = memref.load %arg4[%c6] : memref<7xf32, #tpu.memory_space<smem>>
    %34 = vector.broadcast %33 : f32 to vector<32x128xf32>
    %35 = arith.subf %3, %34 : vector<32x128xf32>
    %36 = math.tanh %35 : vector<32x128xf32>
    %37 = arith.addf %32, %36 : vector<32x128xf32>
    %c0_3 = arith.constant 0 : index
    %38 = memref.load %arg2[%c0_3] : memref<7xf32, #tpu.memory_space<smem>>
    %39 = vector.broadcast %38 : f32 to vector<32x128xf32>
    %40 = arith.mulf %39, %37 : vector<32x128xf32>
    %c0_4 = arith.constant 0 : index
    %c0_5 = arith.constant 0 : index
    %41 = vector.load %arg6[%c0_4, %c0_5] : memref<32x128xf32, #tpu.memory_space<vmem>>, vector<32x128xf32>
    tpu.vector_store %arg6[%c0_4, %c0_5], %40 {strides = array<i32>} : memref<32x128xf32, #tpu.memory_space<vmem>>, vector<32x128xf32>,
    return
  }
  func.func @transform_0(%arg0: i32, %arg1: i32, %arg2: memref<7xf32, #tpu.memory_space<smem>>, %arg3: memref<7xf32, #tpu.memory_space<smem>>, %arg4: memref<7xf32, #tpu.memory_space<smem>>) -> (i32, i32) {
    %c0_i32 = arith.constant 0 : i32
    return %arg0, %arg1 : i32, i32
  }
  func.func @transform_1(%arg0: i32, %arg1: i32, %arg2: memref<7xf32, #tpu.memory_space<smem>>, %arg3: memref<7xf32, #tpu.memory_space<smem>>, %arg4: memref<7xf32, #tpu.memory_space<smem>>) -> (i32, i32) {
    %c0_i32 = arith.constant 0 : i32
    return %arg0, %arg1 : i32, i32
  }
}

</mosaic_0001>

<bundles_post_ra>
// kernel: tpu_custom_call.1
= control target key start
LH: loop header
LB: loop body
LE: loop exit
PB: predicated region body
PF: predicated region fallthrough
CT: control target
= control target key end

     0   :  { %s1033_s0 = inlined_call_operand.hbm [shape: f32[7], index: 0, kind: input, shape index: {}]   ;;  %s1034_s3 = inlined_call_operand.hbm [shape: f32[64,256], index: 3, kind: input, shape index: {}]   ;;  %s1035_s4 = inlined_call_operand.hbm [shape: f32[64,256], index: 4, kind: output, shape index: {}]   ;;  %s1036_s1 = inlined_call_operand.vmem [shape: f32[7], index: 1, kind: input, shape index: {}]   ;;  %s1037_s2 = inlined_call_operand.vmem [shape: f32[7], index: 2, kind: input, shape index: {}]  }
   0x1   :  { %s556_s17 = scalar_lea.hbm %s1033_s0, 16 }
   0x2   :  { %p557_p0 = scmp.ne.s32.totalorder %s1033_s0, %s556_s17  ;;  %p560_p1 = scmp.lt.u32.totalorder %s556_s17, %s1033_s0 }
   0x4   :  { %p562_p2 = pnand %p560_p1, %p557_p0 }
   0x6   :  { %565 = shalt.err (!%p562_p2)  }
   0x7   :  { %s722_s22 = smov [#allocation3]   ;;  %s11_s27 = sshll.u32 %s1036_s1, 4  ;;  %s12_s27 = int_to_ptr.vmem [resolvable:$true] %s11_s27 }
   0x8   :  { %10 = dma.hbm_to_smem %s1033_s0, 16, %s722_s22, [#allocation2] }
   0x9   :  { %s15_s30 = sshll.u32 %s1037_s2, 4  ;;  %s566_s5 = scalar_lea.vmem %s12_s27, 16  ;;  %s16_s30 = int_to_ptr.vmem [resolvable:$true] %s15_s30 }
   0xa   :  { %p567_p3 = scmp.ne.s32.totalorder %s12_s27, %s566_s5  ;;  %p571_p4 = scmp.lt.s32.totalorder %s12_s27, %s12_s27 }
   0xb   :  { %p572_p5 = scmp.lt.s32.totalorder %s566_s5, %s566_s5 }
   0xd   :  { %p573_p6 = por %p572_p5, %p571_p4 }
   0xf   :  { %p574_p7 = pnand %p573_p6, %p567_p3 }
  0x11   :  { %577 = shalt.err (!%p574_p7)  }
  0x12   :  { %s723_s6 = smov [#allocation4]   ;;  %s578_s0 = scalar_lea.vmem %s16_s30, 16 }
  0x13   :  { %14 = dma.vmem_to_smem %s12_s27, 16, %s723_s6, [#allocation2] }
  0x14   :  { %p579_p8 = scmp.ne.s32.totalorder %s16_s30, %s578_s0  ;;  %p583_p9 = scmp.lt.s32.totalorder %s16_s30, %s16_s30 }
  0x15   :  { %p584_p10 = scmp.lt.s32.totalorder %s578_s0, %s578_s0 }
  0x17   :  { %p585_p11 = por %p584_p10, %p583_p9 }
  0x19   :  { %p586_p12 = pnand %p585_p11, %p579_p8 }
  0x1b   :  { %589 = shalt.err (!%p586_p12)  }
  0x1c   :  { %s724_s1 = smov [#allocation5]  }
  0x1d   :  { %18 = dma.vmem_to_smem %s16_s30, 16, %s724_s1, [#allocation2] }
  0x1e   :  { %680 = dma.done.wait [#allocation2], 48 }
  0x1f   :  { %681 = vsyncadd [#allocation2], 4294967248 }
  0x20   :  { %20 = sfence }
  0x21   :  { %21 = vsyncpa [#allocation7], 0 }
  0x22   :  { %23 = vsyncpa [#allocation7 + $0x1], 0 }
  0x23   :  { %24 = vsyncpa [#allocation8], 0 }
  0x24   :  { %26 = vsyncpa [#allocation8 + $0x1], 0  ;;  %s776_s2 = smov 0   ;;  %s778_s7 = smov 0  }
  0x25   :  { %s780_s8 = smov 0   ;;  %s782_s9 = smov 0  }
  0x26   :  { %s784_s10 = smov 0   ;;  %s786_s11 = smov 0  }
  0x27   :  { %s788_s12 = smov 0   ;;  %s790_s13 = smov 0  }
  0x28 LB: > { %s388_s14 = sadd.s32 4294967295, %s720_s13   ;;  %s389_s15 = sadd.s32 4294967294, %s720_s13   ;;  %s720_s13 = sphi %s790_s13, %s32_s13   ;;  %s716_s12 = sphi %s788_s12, %s1052_s12   ;;  %s712_s11 = sphi %s786_s11, %s1051_s11   ;;  %s708_s10 = sphi %s784_s10, %s1050_s10   ;;  %s704_s9 = sphi %s782_s9, %s1049_s9   ;;  %s700_s8 = sphi %s780_s8, %s1048_s8   ;;  %s696_s7 = sphi %s778_s7, %s1047_s7   ;;  %s692_s2 = sphi %s776_s2, %s1046_s2  }
  0x29   : > { %s41_s16 = sadd.s32 1, %s712_s11  ;;  %s44_s17 = sadd.s32 1, %s716_s12 }
  0x2a   : > { %p42_p13 = scmp.ge.s32.totalorder %s41_s16, 2  ;;  %s53_s18 = sadd.s32 1, %s700_s8 }
  0x2b   : > { %p60_p0 = scmp.ne.s32.totalorder %s700_s8, %s696_s7  ;;  %p61_p1 = scmp.eq.s32.totalorder %s720_s13, 0 }
  0x2c   : > { %s1054_s16 = smov (%p42_p13, %s41_s16), 0  ;;  %s1056_s17 = smov (!%p42_p13, %s44_s17), %s716_s12 }
  0x2d   : > { %s49_s19 = ssub.s32 %s712_s11, %s1054_s16  ;;  %p829_p2 = por %p61_p1, %p60_p0 }
  0x2e   : > { %p46_p3 = scmp.ge.s32.totalorder %s1056_s17, 2  ;;  %p66_p4 = scmp.ne.s32.totalorder %s696_s7, %s692_s2 }
  0x2f   : > { %p67_p5 = scmp.eq.s32.totalorder %s388_s14, 0  ;;  %p92_p6 = scmp.eq.s32.totalorder %s388_s14, 3 }
  0x30   : > { %s1058_s17 = smov (%p46_p3, %s1056_s17), 0  ;;  %p98_p9 = scmp.eq.s32.totalorder %s389_s15, 3 }
  0x31   : > { %p837_p7 = por %p67_p5, %p66_p4  ;;  %p841_p8 = por %p92_p6, %p60_p0 }
  0x32   : > { %s48_s23 = ssub.s32 %s716_s12, %s1058_s17  ;;  %p847_p11 = por %p98_p9, %p66_p4 }
  0x33   : > { %s1041_s22 = scalar_select %p841_p8, 1, 0 }
  0x34   : > { %s50_s24 = sor.u32 %s49_s19, %s48_s23  ;;  %p425_p12 = scmp.lt.s32.totalorder %s720_s13, 4 }
  0x35   : > { %p51_p10 = scmp.eq.s32.totalorder %s50_s24, 0  ;;  %s118_s26 = sand.u32 1, %s700_s8  }
  0x36   : > { %s1042_s25 = scalar_select %p847_p11, 1, 0 }
  0x37   : > { %s854_s27 = scalar_select %p51_p10, %s700_s8, %s53_s18  }
  0x38   : > { %s392_s28 = sshll.u32 %s118_s26, 5  ;;  %s411_s29 = sshll.u32 %s716_s12, 3 }
  0x39   : > { %s128_s30 = sadd.s32 %s712_s11, %s411_s29  ;;  %s122_s5 = scalar_lea.vmem [#allocation6], %s392_s28 }
  0x3a   : > { %s131_s6 = sshll.u32 %s122_s5, 4  ;;  %s395_s0 = sshll.u32 %s128_s30, 7  ;;  %s858_s6 = int_to_ptr.vmem [resolvable:$true] %s131_s6 }
  0x3b   : > { %s863_s15 = scalar_lea.hbm %s1034_s3, %s395_s0  ;;  %p867_p13 = pnand %p425_p12, %p829_p2 }
  0x3c   : > { %s871_s19 = scalar_lea.sflag [#allocation7], %s118_s26  ;;  %s590_s23 = scalar_lea.hbm %s863_s15, 512 }
  0x3d   : > { %p591_p0 = scmp.ne.s32.totalorder %s863_s15, %s590_s23  ;;  %p592_p1 = pneg %p867_p13 }
  0x3e   : > { %s595_s28 = scalar_lea.hbm %s1034_s3, 2048  ;;  %p596_p2 = scmp.lt.u32.totalorder %s863_s15, %s1034_s3 }
  0x3f   : > { %p593_p3 = pnand %p592_p1, %p591_p0  ;;  %p597_p5 = scmp.lt.u32.totalorder %s595_s28, %s590_s23 }
  0x40   : > { %p599_p9 = scmp.lt.u32.totalorder %s590_s23, %s863_s15 }
  0x41   : > { %p594_p4 = pneg %p593_p3  ;;  %p598_p6 = por %p597_p5, %p596_p2 }
  0x43   : > { %p600_p10 = por %p599_p9, %p598_p6 }
  0x45   : > { %p601_p12 = pnand %p600_p10, %p594_p4 }
  0x47   : > { %604 = shalt.err (!%p601_p12)
}
  0x48   : > { %s605_s26 = scalar_lea.vmem %s858_s6, 512  ;;  %s725_s5 = smov [#allocation6]  }
  0x49   : > { %p606_p0 = scmp.ne.s32.totalorder %s858_s6, %s605_s26  ;;  %s610_s0 = sshll.u32 %s725_s5, 4  ;;  %s611_s0 = int_to_ptr.vmem [resolvable:$false] %s610_s0 }
  0x4a   : > { %s612_s1 = scalar_lea.vmem %s611_s0, 1024  ;;  %p613_p8 = scmp.lt.s32.totalorder %s858_s6, %s611_s0 }
  0x4b   : > { %p608_p3 = pnand %p606_p0, %p592_p1  ;;  %p614_p2 = scmp.lt.s32.totalorder %s612_s1, %s605_s26 }
  0x4d   : > { %p609_p11 = pneg %p608_p3  ;;  %p615_p5 = por %p614_p2, %p613_p8 }
  0x4f   : > { %p616_p6 = pnand %p615_p5, %p609_p11 }
  0x51   : > { %619 = shalt.err (!%p616_p6)
}
  0x52   : > { %s726_s14 = smov 256   ;;  %s727_s23 = smov 128  }
  0x53   : > { %s728_s20 = smov 8   ;;  %p396_p1 = scmp.ge.s32.totalorder %s720_s13, 1 }
  0x54   : > { %420 = dma.hbm_to_vmem [thread:$0]  (!%p867_p13), %s863_s15, 512, %s858_s6, %s871_s19, %s726_s14, %s727_s23, %s728_s20  }
  0x55   : > { %p139_p4 = scmp.lt.s32.totalorder %s720_s13, 5 }
  0x57   : > { %p140_p9 = pnand %p396_p1, %p139_p4 }
  0x58   : > { %s902_s24 = sand.u32 (!%p140_p9), 1, %s696_s7  }
  0x59   : > { %143 = sbr.rel (%p140_p9) target bundleno = 171 (0xab), region = 24  ;;  %s397_s28 = sshll.u32 (!%p140_p9), %s902_s24, 5 }
  0x5a   : > { %s146_s29 = scalar_lea.sflag (!%p140_p9), [#allocation7], %s902_s24  ;;  %s908_s30 = scalar_lea.vmem (!%p140_p9), [#allocation6], %s397_s28 }
  0x60   : > { %683 = dma.done.wait (%p837_p7), %s146_s29, 512  }
  0x61   : > { %685 = vsyncadd (%p837_p7), %s146_s29, 4294966784  ;;  %s174_s6 = sld [smem:[#allocation4]]  ;;  %s399_s18 = sld [smem:[#allocation5 + $0x1]]  ;;  %v170_v0 = vld [vmem:[%s908_s30] sm:$0xff]  ;;  %v171_v6 = vld [vmem:[%s908_s30 + $0x8] sm:$0xff] }
  0x62   : > { %s180_s15 = sld [smem:[#allocation5]]  ;;  %s400_s19 = sld [smem:[#allocation5 + $0x2]]  ;;  %v172_v20 = vld [vmem:[%s908_s30 + $0x10] sm:$0xff]  ;;  %v173_v30 = vld [vmem:[%s908_s30 + $0x18] sm:$0xff] }
  0x63   : > { %s401_s26 = sld [smem:[#allocation5 + $0x3]]  ;;  %s402_s5 = sld [smem:[#allocation5 + $0x4]] }
  0x64   : > { %s403_s0 = sld [smem:[#allocation5 + $0x5]]  ;;  %s404_s1 = sld [smem:[#allocation5 + $0x6]] }
  0x65   : > { %s949_s21 = sld [smem:[#allocation3]]  ;;  %s964_s14 = scalar_lea.vmem [#allocation9], %s397_s28 }
  0x66   : > { %s412_s23 = sshll.u32 %s708_s10, 3  ;;  %s300_s28 = sshll.u32 %s964_s14, 4  ;;  %s973_s28 = int_to_ptr.vmem [resolvable:$true] %s300_s28 }
  0x67   : > { %v175_v1 = vstv %s174_s6  ;;  %v917_v4 = vstv %s399_s18  ;;  %s297_s20 = sadd.s32 %s704_s9, %s412_s23  ;;  %s620_s9 = scalar_lea.vmem %s973_s28, 512 }
  0x68   : > { %v915_v2 = vstv %s180_s15  ;;  %v176_v3 = vmul.f32 %v175_v1, %v170_v0  ;;  %v919_v5 = vstv %s400_s19  ;;  %v177_v15 = vmul.f32 %v175_v1, %v171_v6  ;;  %s408_s29 = sshll.u32 %s297_s20, 7  ;;  %s285_s15 = scalar_lea.sflag [#allocation8], %s902_s24 }
  0x69   : > { %v922_v7 = vstv %s401_s26  ;;  %v924_v8 = vstv %s402_s5  ;;  %v178_v24 = vmul.f32 %v175_v1, %v172_v20  ;;  %v179_v38 = vmul.f32 %v175_v1, %v173_v30  ;;  %s978_s6 = scalar_lea.hbm %s1035_s4, %s408_s29  ;;  %p621_p7 = scmp.ne.s32.totalorder %s973_s28, %s620_s9 }
  0x6a   : > { %v182_v9 = vsub.f32 %v176_v3, %v915_v2  ;;  %v192_v10 = vsub.f32 %v176_v3, %v917_v4  ;;  %v206_v11 = vsub.f32 %v176_v3, %v919_v5  ;;  %v220_v12 = vsub.f32 %v176_v3, %v922_v7  ;;  %p1044_p8 = scmp.ne.s32.totalorder %s1041_s22, 0  ;;  %s729_s18 = smov [#allocation9]  }
  0x6b   : > { %v930_v13 = vstv %s403_s0  ;;  %v932_v14 = vstv %s404_s1  ;;  %v234_v16 = vsub.f32 %v176_v3, %v924_v8  ;;  %v183_v19 = vsub.f32 %v177_v15, %v915_v2  ;;  %s624_s19 = sshll.u32 %s729_s18, 4  ;;  %s625_s19 = int_to_ptr.vmem [resolvable:$false] %s624_s19 }
  0x6c   : > { %500 = vtanh.f32 %v182_v9  ;;  %v248_v17 = vsub.f32 %v176_v3, %v930_v13  ;;  %v262_v18 = vsub.f32 %v176_v3, %v932_v14  ;;  %v193_v21 = vsub.f32 %v177_v15, %v917_v4  ;;  %p622_p11 = pnand %p621_p7, %p1044_p8  ;;  %s626_s26 = scalar_lea.vmem %s625_s19, 1024 }
  0x6d   : > { %502 = vtanh.f32 %v192_v10  ;;  %v207_v22 = vsub.f32 %v177_v15, %v919_v5  ;;  %v221_v23 = vsub.f32 %v177_v15, %v922_v7  ;;  %v235_v25 = vsub.f32 %v177_v15, %v924_v8  ;;  %p627_p10 = scmp.lt.s32.totalorder %s973_s28, %s625_s19  ;;  %p628_p12 = scmp.lt.s32.totalorder %s626_s26, %s620_s9 }
  0x6e   : > { %504 = vtanh.f32 %v206_v11  ;;  %v249_v26 = vsub.f32 %v177_v15, %v930_v13  ;;  %v263_v27 = vsub.f32 %v177_v15, %v932_v14  ;;  %v184_v29 = vsub.f32 %v178_v24, %v915_v2  ;;  %p623_p13 = pneg %p622_p11 }
  0x6f   : > { %506 = vtanh.f32 %v220_v12  ;;  %v194_v32 = vsub.f32 %v178_v24, %v917_v4  ;;  %v208_v35 = vsub.f32 %v178_v24, %v919_v5  ;;  %v222_v37 = vsub.f32 %v178_v24, %v922_v7  ;;  %p629_p0 = por %p628_p12, %p627_p10 }
  0x70   : > { %508 = vtanh.f32 %v234_v16  ;;  %v236_v41 = vsub.f32 %v178_v24, %v924_v8  ;;  %v250_v43 = vsub.f32 %v178_v24, %v930_v13  ;;  %v264_v46 = vsub.f32 %v178_v24, %v932_v14 }
  0x71   : > { %510 = vtanh.f32 %v248_v17  ;;  %v185_v48 = vsub.f32 %v179_v38, %v915_v2  ;;  %v195_v51 = vsub.f32 %v179_v38, %v917_v4  ;;  %v209_v54 = vsub.f32 %v179_v38, %v919_v5  ;;  %p630_p3 = pnand %p629_p0, %p623_p13 }
  0x72   : > { %512 = vtanh.f32 %v262_v18  ;;  %v223_v57 = vsub.f32 %v179_v38, %v922_v7  ;;  %v275_v59 = vstv %s949_s21  ;;  %v237_v63 = vsub.f32 %v179_v38, %v924_v8 }
  0x73   : > { %514 = vtanh.f32 %v183_v19  ;;  %v251_v4 = vsub.f32 %v179_v38, %v930_v13  ;;  %v265_v8 = vsub.f32 %v179_v38, %v932_v14 }
  0x74   : > { %516 = vtanh.f32 %v193_v21 }
  0x75   : > { %518 = vtanh.f32 %v207_v22 }
  0x76   : > { %v501_v28 = vpop.eup %500  ;;  %520 = vtanh.f32 %v221_v23 }
  0x77   : > { %v503_v31 = vpop.eup %502  ;;  %522 = vtanh.f32 %v235_v25 }
  0x78   : > { %v505_v33 = vpop.eup %504  ;;  %v200_v34 = vadd.f32 %v503_v31, %v501_v28  ;;  %524 = vtanh.f32 %v249_v26 }
  0x79   : > { %v507_v36 = vpop.eup %506  ;;  %526 = vtanh.f32 %v263_v27 }
  0x7a   : > { %v509_v39 = vpop.eup %508  ;;  %v214_v40 = vadd.f32 %v505_v33, %v200_v34  ;;  %528 = vtanh.f32 %v184_v29 }
  0x7b   : > { %v511_v42 = vpop.eup %510  ;;  %530 = vtanh.f32 %v194_v32 }
  0x7c   : > { %v513_v44 = vpop.eup %512  ;;  %v228_v45 = vadd.f32 %v507_v36, %v214_v40  ;;  %532 = vtanh.f32 %v208_v35 }
  0x7d   : > { %v515_v47 = vpop.eup %514  ;;  %534 = vtanh.f32 %v222_v37 }
  0x7e   : > { %v517_v49 = vpop.eup %516  ;;  %v242_v50 = vadd.f32 %v509_v39, %v228_v45  ;;  %536 = vtanh.f32 %v236_v41 }
  0x7f   : > { %v519_v52 = vpop.eup %518  ;;  %v201_v53 = vadd.f32 %v517_v49, %v515_v47  ;;  %538 = vtanh.f32 %v250_v43 }
  0x80   : > { %v521_v55 = vpop.eup %520  ;;  %v256_v56 = vadd.f32 %v511_v42, %v242_v50  ;;  %540 = vtanh.f32 %v264_v46 }
  0x81   : > { %v523_v58 = vpop.eup %522  ;;  %v215_v60 = vadd.f32 %v519_v52, %v201_v53  ;;  %542 = vtanh.f32 %v185_v48 }
  0x82   : > { %v525_v61 = vpop.eup %524  ;;  %v270_v62 = vadd.f32 %v513_v44, %v256_v56  ;;  %544 = vtanh.f32 %v195_v51 }
  0x83   : > { %v527_v0 = vpop.eup %526  ;;  %v229_v1 = vadd.f32 %v521_v55, %v215_v60  ;;  %546 = vtanh.f32 %v209_v54 }
  0x84   : > { %v529_v2 = vpop.eup %528  ;;  %v276_v3 = vmul.f32 %v275_v59, %v270_v62  ;;  %548 = vtanh.f32 %v223_v57 }
  0x85   : > { %v531_v5 = vpop.eup %530  ;;  %v243_v6 = vadd.f32 %v523_v58, %v229_v1  ;;  %550 = vtanh.f32 %v237_v63 }
  0x86   : > { %v533_v7 = vpop.eup %532  ;;  %280 = vst [vmem:[%s964_s14] sm:$0xff] %v276_v3  ;;  %v202_v9 = vadd.f32 %v531_v5, %v529_v2  ;;  %552 = vtanh.f32 %v251_v4 }
  0x87   : > { %v535_v10 = vpop.eup %534  ;;  %v257_v11 = vadd.f32 %v525_v61, %v243_v6  ;;  %554 = vtanh.f32 %v265_v8 }
  0x88   : > { %v537_v12 = vpop.eup %536  ;;  %v216_v15 = vadd.f32 %v533_v7, %v202_v9 }
  0x89   : > { %v539_v16 = vpop.eup %538  ;;  %v271_v13 = vadd.f32 %v527_v0, %v257_v11 }
  0x8a   : > { %v541_v17 = vpop.eup %540  ;;  %v230_v18 = vadd.f32 %v535_v10, %v216_v15 }
  0x8b   : > { %v543_v19 = vpop.eup %542  ;;  %v277_v20 = vmul.f32 %v275_v59, %v271_v13 }
  0x8c   : > { %v545_v21 = vpop.eup %544  ;;  %v244_v22 = vadd.f32 %v537_v12, %v230_v18 }
  0x8d   : > { %v547_v23 = vpop.eup %546  ;;  %281 = vst [vmem:[%s964_s14 + $0x8] sm:$0xff] %v277_v20  ;;  %v203_v14 = vadd.f32 %v545_v21, %v543_v19 }
  0x8e   : > { %v549_v24 = vpop.eup %548  ;;  %v258_v25 = vadd.f32 %v539_v16, %v244_v22 }
  0x8f   : > { %v217_v26 = vadd.f32 %v547_v23, %v203_v14  ;;  %v551_v27 = vpop.eup %550 }
  0x90   : > { %v272_v28 = vadd.f32 %v541_v17, %v258_v25  ;;  %v553_v30 = vpop.eup %552 }
  0x91   : > { %v231_v29 = vadd.f32 %v549_v24, %v217_v26  ;;  %v555_v33 = vpop.eup %554 }
  0x92   : > { %v278_v31 = vmul.f32 %v275_v59, %v272_v28 }
  0x93   : > { %v245_v32 = vadd.f32 %v551_v27, %v231_v29 }
  0x94   : > { %282 = vst [vmem:[%s964_s14 + $0x10] sm:$0xff] %v278_v31 }
  0x95   : > { %v259_v34 = vadd.f32 %v553_v30, %v245_v32 }
  0x97   : > { %v273_v35 = vadd.f32 %v555_v33, %v259_v34 }
  0x99   : > { %v279_v36 = vmul.f32 %v275_v59, %v273_v35 }
  0x9b   : > { %283 = vst [vmem:[%s964_s14 + $0x18] sm:$0xff] %v279_v36 }
  0x9c   : > { %633 = shalt.err (!%p630_p3)
}
  0x9d   : > { %s634_s5 = scalar_lea.hbm %s978_s6, 512  ;;  %s638_s21 = scalar_lea.hbm %s1035_s4, 2048 }
  0x9e   : > { %p635_p2 = scmp.ne.s32.totalorder %s978_s6, %s634_s5  ;;  %p639_p1 = scmp.lt.u32.totalorder %s978_s6, %s1035_s4 }
  0x9f   : > { %p640_p4 = scmp.lt.u32.totalorder %s638_s21, %s634_s5  ;;  %p642_p7 = scmp.lt.u32.totalorder %s634_s5, %s978_s6 }
  0xa0   : > { %p636_p5 = pnand %p635_p2, %p1044_p8 }
  0xa1   : > { %p641_p9 = por %p640_p4, %p639_p1 }
  0xa2   : > { %p637_p6 = pneg %p636_p5 }
  0xa3   : > { %p643_p11 = por %p642_p7, %p641_p9 }
  0xa5   : > { %p644_p13 = pnand %p643_p11, %p637_p6 }
  0xa7   : > { %647 = shalt.err (!%p644_p13)
}
  0xa8   : > { %s730_s20 = smov 128   ;;  %s731_s29 = smov 256  }
  0xa9   : > { %s732_s10 = smov 8  }
  0xaa   : > { %415 = dma.vmem_to_hbm [thread:$0]  (%p1044_p8), %s973_s28, 512, %s978_s6, %s285_s15, %s730_s20, %s731_s29, %s732_s10  }
  0xab PF: > { %p426_p10 = scmp.ge.s32.totalorder %s720_s13, 2  ;;  %s315_s30 = sand.u32 1, %s692_s2  }
  0xac   : > { %p1045_p12 = scmp.ne.s32.totalorder %s1042_s25, 0  ;;  %s316_s9 = scalar_lea.sflag [#allocation8], %s315_s30 }
  0xae   : > { %p422_p0 = pnand %p426_p10, %p1045_p12 }
  0xb0   : > { %687 = dma.done.wait (!%p422_p0), %s316_s9, 512  }
  0xb1   : > { %689 = vsyncadd (!%p422_p0), %s316_s9, 4294966784  ;;  %s32_s13 = sadd.s32 1, %s720_s13   ;;  %s1046_s2 = smov %s696_s7 }
  0xb2   : > { %p29_p3 = scmp.ge.s32.totalorder %s32_s13, 6   ;;  %s1047_s7 = smov %s700_s8 }
  0xb3   : > { %s1048_s8 = smov %s854_s27  ;;  %s1049_s9 = smov %s712_s11 }
  0xb4   : > { %s1050_s10 = smov %s716_s12  ;;  %s1051_s11 = smov %s1054_s16 }
  0xb5   : > { %s1052_s12 = smov %s1058_s17  ;;  %31 = sbr.rel (!%p29_p3) target bundleno = 40 (0x28), region = 69 }
  0xbc   :  { %321 = vsyncpa [#allocation7], 1 }
  0xbd   :  { %323 = vsyncpa [#allocation7 + $0x1], 1 }
  0xbe   :  { %324 = vsyncpa [#allocation8], 1 }
  0xbf   :  { %326 = vsyncpa [#allocation8 + $0x1], 1 }

</bundles_post_ra>
